<compile_context>
chip_gen: v6e
topology: v6e:2x2x1
jax: 0.10.0
libtpu: 0.0.40
codegen_flags: <defaults>
</compile_context>

<pallas_src>
import functools
import math

import jax
import jax.numpy as jnp
from jax.experimental import pallas as pl
from jax.experimental.pallas import tpu as pltpu


def _deepset_kernel(x_ref, w1_ref, b1_ref, w2_ref, b2_ref,
                    w3_ref, b3_ref, w4_ref, b4_ref, out_ref,
                    *, set_size, dim_in):
    # x_ref: (TB*S, dim_in) — TB complete sets, rows of one set are contiguous.
    rows = x_ref.shape[0]
    tb = rows // set_size
    hidden = w1_ref.shape[1]
    inv_s = 1.0 / float(set_size)          # compile-time constant: VPU mul, no divide

    x = x_ref[...]                          # (rows, dim_in)

    # --- pre_mean layer 1: Linear(dim_in, H) -> ReLU -------------------------
    if dim_in == 1:
        # Degenerate K=1 contraction: VPU broadcast multiply instead of MXU.
        h1 = x * w1_ref[...] + b1_ref[...]                       # (rows,1)*(1,H)
    else:
        h1 = jnp.dot(x, w1_ref[...],
                     preferred_element_type=jnp.float32) + b1_ref[...]
    h1 = jnp.maximum(h1, 0.0)                                    # (rows, H)

    # --- set mean BEFORE the second Linear (linearity of Linear over mean) ---
    # Layout-clean when set_size % 8 == 0; still correct otherwise (may relayout).
    m1 = jnp.sum(h1.reshape(tb, set_size, hidden), axis=1) * inv_s   # (TB, H)

    # --- pre_mean layer 2 on the S-fold smaller reduced tensor ---------------
    h2 = jnp.dot(m1, w2_ref[...],
                 preferred_element_type=jnp.float32) + b2_ref[...]   # (TB, H)

    # --- post_mean: Linear(H, H) -> ReLU -> Linear(H, 1) ---------------------
    g = jnp.dot(h2, w3_ref[...],
                preferred_element_type=jnp.float32) + b3_ref[...]
    g = jnp.maximum(g, 0.0)

    # Final Linear(H, 1) as a lane reduction: no 128-lane output padding,
    # sigmoid runs on TB scalars instead of TB*128.
    o = jnp.sum(g * w4_ref[...], axis=-1, keepdims=True) + b4_ref[...]  # (TB, 1)
    out_ref[...] = jax.nn.sigmoid(o)


def _pick_batch_tile(batch, set_size, max_rows=32768):
    """Sets per tile TB. TB divides batch, TB*S <= max_rows, and TB % 8 == 0
    unless TB == batch (keeps the (8,128) sublane rule on every BlockSpec)."""
    total_rows = batch * set_size
    if total_rows <= max_rows:
        # Split the batch in two only when there is enough work per half to
        # amortise per-step overhead -> both v7x TensorCores get a tile.
        half = batch // 2
        if batch % 2 == 0 and half % 8 == 0 and half * set_size >= 4096:
            return half
        return batch
    # Large problem: largest divisor tile that fits and respects TB % 8 == 0.
    upper = min(batch, max(max_rows // max(set_size, 1), 1))
    for tb in range(upper, 0, -1):
        if batch % tb == 0 and tb % 8 == 0 and tb * set_size <= max_rows:
            return tb
    # TODO(synk): no clean %8 divisor tile fits max_rows — fall back to one
    # full-batch tile (may need a larger VMEM budget for very large batches).
    return batch


def _vmem_limit_bytes(rows, d_in, hidden, tb):
    """Per-step budget: x double-buffer + h1 intermediate (+ relayout temp) +
    weights + output double-buffer + headroom. Clamped to 48 MiB (v7x-safe)."""
    est = (2 * rows * max(d_in, 1) * 4
           + 2 * rows * hidden * 4
           + 4 * hidden * hidden * 4
           + 8 * hidden * 4
           + 2 * tb * 4
           + (4 << 20))
    return int(min(max(est, 32 << 20), 48 << 20))


def deepset_forward(x, params):
    """x: (B, S, dim_in) float32 -> (B, 1) float32."""
    B, S, D_in = x.shape
    w1, b1, w2, b2, w3, b3, w4, b4 = params
    H = w1.shape[1]

    tb = _pick_batch_tile(B, S)
    rows = tb * S
    grid = (B // tb,)

    # Row-major flatten: batch b occupies rows [b*S, (b+1)*S). No zero-padding.
    x2d = x.reshape(B * S, D_in).astype(jnp.float32)

    kernel = functools.partial(_deepset_kernel, set_size=S, dim_in=D_in)
    rep = lambda i: (0, 0)  # weights/biases: same full block every grid step

    out = pl.pallas_call(
        kernel,
        out_shape=jax.ShapeDtypeStruct((B, 1), jnp.float32),
        grid=grid,
        in_specs=[
            pl.BlockSpec((rows, D_in), lambda i: (i, 0)),   # x rows, double-buffered
            pl.BlockSpec((D_in, H), rep), pl.BlockSpec((1, H), rep),   # w1, b1
            pl.BlockSpec((H, H), rep),    pl.BlockSpec((1, H), rep),   # w2, b2
            pl.BlockSpec((H, H), rep),    pl.BlockSpec((1, H), rep),   # w3, b3
            pl.BlockSpec((1, H), rep),    pl.BlockSpec((1, 1), rep),   # w4 row, b4
        ],
        out_specs=pl.BlockSpec((tb, 1), lambda i: (i, 0)),
        compiler_params=pltpu.CompilerParams(
            dimension_semantics=("parallel",),      # shard batch tiles over TCs (v7x)
            vmem_limit_bytes=_vmem_limit_bytes(rows, D_in, H, tb),
        ),
    )(x2d,
      w1.astype(jnp.float32), b1.reshape(1, H).astype(jnp.float32),
      w2.astype(jnp.float32), b2.reshape(1, H).astype(jnp.float32),
      w3.astype(jnp.float32), b3.reshape(1, H).astype(jnp.float32),
      w4.reshape(1, H).astype(jnp.float32), b4.reshape(1, 1).astype(jnp.float32))

    return out


def init_params(key, dim_in=1, dim_hidden=32):
    """Deterministic PyTorch-style Linear init: U(-1/sqrt(fan_in), 1/sqrt(fan_in))."""
    ks = jax.random.split(key, 8)

    def lin(kw, kb, fin, fout):
        bound = 1.0 / math.sqrt(fin)
        w = jax.random.uniform(kw, (fin, fout), jnp.float32, -bound, bound)
        b = jax.random.uniform(kb, (fout,), jnp.float32, -bound, bound)
        return w, b

    w1, b1 = lin(ks[0], ks[1], dim_in, dim_hidden)
    w2, b2 = lin(ks[2], ks[3], dim_hidden, dim_hidden)
    w3, b3 = lin(ks[4], ks[5], dim_hidden, dim_hidden)
    w4, b4 = lin(ks[6], ks[7], dim_hidden, 1)
    return (w1, b1, w2, b2, w3, b3, w4, b4)


def deepset_reference(x, params):
    w1, b1, w2, b2, w3, b3, w4, b4 = params
    h = jnp.maximum(x @ w1 + b1, 0.0)
    h = h @ w2 + b2
    m = jnp.mean(h, axis=1)
    g = jnp.maximum(m @ w3 + b3, 0.0)
    return jax.nn.sigmoid(g @ w4 + b4)


if __name__ == "__main__":
    B, S, D_IN, H = 2, 8, 1, 32

    key = jax.random.PRNGKey(0)
    k_x, k_p = jax.random.split(key)
    x = jax.random.normal(k_x, (B, S, D_IN), dtype=jnp.float32)
    params = init_params(k_p, dim_in=D_IN, dim_hidden=H)

    out = jax.block_until_ready(deepset_forward(x, params))
    ref = jax.block_until_ready(deepset_reference(x, params))

    assert out.shape == (B, 1)
    assert jnp.allclose(out, ref, atol=1e-5, rtol=1e-5), (out, ref)

    print("KERNEL_OK")
</pallas_src>

<mosaic_0001>
module attributes {stable_mosaic.version = 11 : i64} {
  func.func @_deepset_kernel(%arg0: i32, %arg1: memref<16x1xf32, #tpu.memory_space<vmem>>, %arg2: memref<1x32xf32, #tpu.memory_space<vmem>>, %arg3: memref<1x32xf32, #tpu.memory_space<vmem>>, %arg4: memref<32x32xf32, #tpu.memory_space<vmem>>, %arg5: memref<1x32xf32, #tpu.memory_space<vmem>>, %arg6: memref<32x32xf32, #tpu.memory_space<vmem>>, %arg7: memref<1x32xf32, #tpu.memory_space<vmem>>, %arg8: memref<1x32xf32, #tpu.memory_space<vmem>>, %arg9: memref<1x1xf32, #tpu.memory_space<vmem>>, %arg10: memref<2x1xf32, #tpu.memory_space<vmem>>) attributes {dimension_semantics = [#tpu.dimension_semantics<parallel>], iteration_bounds = array<i64: 1>, scalar_prefetch = 0 : i64, scratch_operands = 0 : i64, tpu.core_type = #tpu.core_type<tc>, window_params = [{transform_indices = @transform_0, window_bounds = array<i64: 16, 1>}, {pipeline_mode = #tpu.pipeline_mode<synchronous>, transform_indices = @transform_1, window_bounds = array<i64: 1, 32>}, {pipeline_mode = #tpu.pipeline_mode<synchronous>, transform_indices = @transform_2, window_bounds = array<i64: 1, 32>}, {pipeline_mode = #tpu.pipeline_mode<synchronous>, transform_indices = @transform_3, window_bounds = array<i64: 32, 32>}, {pipeline_mode = #tpu.pipeline_mode<synchronous>, transform_indices = @transform_4, window_bounds = array<i64: 1, 32>}, {pipeline_mode = #tpu.pipeline_mode<synchronous>, transform_indices = @transform_5, window_bounds = array<i64: 32, 32>}, {pipeline_mode = #tpu.pipeline_mode<synchronous>, transform_indices = @transform_6, window_bounds = array<i64: 1, 32>}, {pipeline_mode = #tpu.pipeline_mode<synchronous>, transform_indices = @transform_7, window_bounds = array<i64: 1, 32>}, {pipeline_mode = #tpu.pipeline_mode<synchronous>, transform_indices = @transform_8, window_bounds = array<i64: 1, 1>}, {transform_indices = @transform_9, window_bounds = array<i64: 2, 1>}]} {
    %c0 = arith.constant 0 : index
    %c0_0 = arith.constant 0 : index
    %0 = vector.load %arg1[%c0, %c0_0] : memref<16x1xf32, #tpu.memory_space<vmem>>, vector<16x1xf32>
    %c0_1 = arith.constant 0 : index
    %c0_2 = arith.constant 0 : index
    %1 = vector.load %arg2[%c0_1, %c0_2] : memref<1x32xf32, #tpu.memory_space<vmem>>, vector<1x32xf32>
    %2 = vector.broadcast %0 : vector<16x1xf32> to vector<16x32xf32>
    %3 = vector.broadcast %1 : vector<1x32xf32> to vector<16x32xf32>
    %4 = arith.mulf %2, %3 : vector<16x32xf32>
    %c0_3 = arith.constant 0 : index
    %c0_4 = arith.constant 0 : index
    %5 = vector.load %arg3[%c0_3, %c0_4] : memref<1x32xf32, #tpu.memory_space<vmem>>, vector<1x32xf32>
    %6 = vector.broadcast %5 : vector<1x32xf32> to vector<16x32xf32>
    %7 = arith.addf %4, %6 : vector<16x32xf32>
    %cst = arith.constant 0.000000e+00 : f32
    %8 = vector.broadcast %cst : f32 to vector<16x32xf32>
    %9 = arith.maximumf %7, %8 : vector<16x32xf32>
    %10 = vector.shape_cast %9 : vector<16x32xf32> to vector<2x8x32xf32>
    %cst_5 = arith.constant dense<0.000000e+00> : vector<2x32xf32>
    %11 = vector.multi_reduction <add>, %10, %cst_5 [1] : vector<2x8x32xf32> to vector<2x32xf32>
    %cst_6 = arith.constant 1.250000e-01 : f32
    %12 = vector.broadcast %cst_6 : f32 to vector<2x32xf32>
    %13 = arith.mulf %11, %12 : vector<2x32xf32>
    %c0_7 = arith.constant 0 : index
    %c0_8 = arith.constant 0 : index
    %14 = vector.load %arg4[%c0_7, %c0_8] : memref<32x32xf32, #tpu.memory_space<vmem>>, vector<32x32xf32>
    %cst_9 = arith.constant dense<0.000000e+00> : vector<2x32xf32>
    %15 = tpu.matmul %13, %14, %cst_9 {dimension_numbers = #tpu.dot_dimension_numbers<[1], [0], [0], [1], [0, 0, 1, 1], [], []>} : vector<2x32xf32>, vector<32x32xf32>, vector<2x32xf32> -> vector<2x32xf32>
    %c0_10 = arith.constant 0 : index
    %c0_11 = arith.constant 0 : index
    %16 = vector.load %arg5[%c0_10, %c0_11] : memref<1x32xf32, #tpu.memory_space<vmem>>, vector<1x32xf32>
    %17 = vector.broadcast %16 : vector<1x32xf32> to vector<2x32xf32>
    %18 = arith.addf %15, %17 : vector<2x32xf32>
    %c0_12 = arith.constant 0 : index
    %c0_13 = arith.constant 0 : index
    %19 = vector.load %arg6[%c0_12, %c0_13] : memref<32x32xf32, #tpu.memory_space<vmem>>, vector<32x32xf32>
    %cst_14 = arith.constant dense<0.000000e+00> : vector<2x32xf32>
    %20 = tpu.matmul %18, %19, %cst_14 {dimension_numbers = #tpu.dot_dimension_numbers<[1], [0], [0], [1], [0, 0, 1, 1], [], []>} : vector<2x32xf32>, vector<32x32xf32>, vector<2x32xf32> -> vector<2x32xf32>
    %c0_15 = arith.constant 0 : index
    %c0_16 = arith.constant 0 : index
    %21 = vector.load %arg7[%c0_15, %c0_16] : memref<1x32xf32, #tpu.memory_space<vmem>>, vector<1x32xf32>
    %22 = vector.broadcast %21 : vector<1x32xf32> to vector<2x32xf32>
    %23 = arith.addf %20, %22 : vector<2x32xf32>
    %cst_17 = arith.constant 0.000000e+00 : f32
    %24 = vector.broadcast %cst_17 : f32 to vector<2x32xf32>
    %25 = arith.maximumf %23, %24 : vector<2x32xf32>
    %c0_18 = arith.constant 0 : index
    %c0_19 = arith.constant 0 : index
    %26 = vector.load %arg8[%c0_18, %c0_19] : memref<1x32xf32, #tpu.memory_space<vmem>>, vector<1x32xf32>
    %27 = vector.broadcast %26 : vector<1x32xf32> to vector<2x32xf32>
    %28 = arith.mulf %25, %27 : vector<2x32xf32>
    %cst_20 = arith.constant dense<0.000000e+00> : vector<2xf32>
    %29 = vector.multi_reduction <add>, %28, %cst_20 [1] : vector<2x32xf32> to vector<2xf32>
    %30 = vector.shape_cast %29 : vector<2xf32> to vector<2x1xf32>
    %c0_21 = arith.constant 0 : index
    %c0_22 = arith.constant 0 : index
    %31 = vector.load %arg9[%c0_21, %c0_22] : memref<1x1xf32, #tpu.memory_space<vmem>>, vector<1x1xf32>
    %32 = vector.broadcast %31 : vector<1x1xf32> to vector<2x1xf32>
    %33 = arith.addf %30, %32 : vector<2x1xf32>
    %34 = arith.negf %33 : vector<2x1xf32>
    %35 = math.exp %34 : vector<2x1xf32>
    %cst_23 = arith.constant 1.000000e+00 : f32
    %36 = vector.broadcast %cst_23 : f32 to vector<2x1xf32>
    %37 = arith.addf %36, %35 : vector<2x1xf32>
    %38 = arith.divf %36, %37 : vector<2x1xf32>
    %c0_24 = arith.constant 0 : index
    %c0_25 = arith.constant 0 : index
    %39 = vector.load %arg10[%c0_24, %c0_25] : memref<2x1xf32, #tpu.memory_space<vmem>>, vector<2x1xf32>
    tpu.vector_store %arg10[%c0_24, %c0_25], %38 {strides = array<i32>} : memref<2x1xf32, #tpu.memory_space<vmem>>, vector<2x1xf32>,
    return
  }
  func.func @transform_0(%arg0: i32) -> (i32, i32) {
    %c0_i32 = arith.constant 0 : i32
    %c0_i32_0 = arith.constant 0 : i32
    return %arg0, %c0_i32 : i32, i32
  }
  func.func @transform_1(%arg0: i32) -> (i32, i32) {
    %c0_i32 = arith.constant 0 : i32
    %c0_i32_0 = arith.constant 0 : i32
    %c0_i32_1 = arith.constant 0 : i32
    return %c0_i32, %c0_i32_0 : i32, i32
  }
  func.func @transform_2(%arg0: i32) -> (i32, i32) {
    %c0_i32 = arith.constant 0 : i32
    %c0_i32_0 = arith.constant 0 : i32
    %c0_i32_1 = arith.constant 0 : i32
    return %c0_i32, %c0_i32_0 : i32, i32
  }
  func.func @transform_3(%arg0: i32) -> (i32, i32) {
    %c0_i32 = arith.constant 0 : i32
    %c0_i32_0 = arith.constant 0 : i32
    %c0_i32_1 = arith.constant 0 : i32
    return %c0_i32, %c0_i32_0 : i32, i32
  }
  func.func @transform_4(%arg0: i32) -> (i32, i32) {
    %c0_i32 = arith.constant 0 : i32
    %c0_i32_0 = arith.constant 0 : i32
    %c0_i32_1 = arith.constant 0 : i32
    return %c0_i32, %c0_i32_0 : i32, i32
  }
  func.func @transform_5(%arg0: i32) -> (i32, i32) {
    %c0_i32 = arith.constant 0 : i32
    %c0_i32_0 = arith.constant 0 : i32
    %c0_i32_1 = arith.constant 0 : i32
    return %c0_i32, %c0_i32_0 : i32, i32
  }
  func.func @transform_6(%arg0: i32) -> (i32, i32) {
    %c0_i32 = arith.constant 0 : i32
    %c0_i32_0 = arith.constant 0 : i32
    %c0_i32_1 = arith.constant 0 : i32
    return %c0_i32, %c0_i32_0 : i32, i32
  }
  func.func @transform_7(%arg0: i32) -> (i32, i32) {
    %c0_i32 = arith.constant 0 : i32
    %c0_i32_0 = arith.constant 0 : i32
    %c0_i32_1 = arith.constant 0 : i32
    return %c0_i32, %c0_i32_0 : i32, i32
  }
  func.func @transform_8(%arg0: i32) -> (i32, i32) {
    %c0_i32 = arith.constant 0 : i32
    %c0_i32_0 = arith.constant 0 : i32
    %c0_i32_1 = arith.constant 0 : i32
    return %c0_i32, %c0_i32_0 : i32, i32
  }
  func.func @transform_9(%arg0: i32) -> (i32, i32) {
    %c0_i32 = arith.constant 0 : i32
    %c0_i32_0 = arith.constant 0 : i32
    return %arg0, %c0_i32 : i32, i32
  }
}

</mosaic_0001>

<bundles_post_ra>
// kernel: tpu_custom_call.1
= control target key start
LH: loop header
LB: loop body
LE: loop exit
PB: predicated region body
PF: predicated region fallthrough
CT: control target
= control target key end

     0   :  { %s508_s0 = inlined_call_operand.vmem [shape: f32[16,1], index: 0, kind: input, shape index: {}]   ;;  %s509_s1 = inlined_call_operand.vmem [shape: f32[1,32], index: 1, kind: input, shape index: {}]   ;;  %s510_s2 = inlined_call_operand.vmem [shape: f32[1,32], index: 2, kind: input, shape index: {}]   ;;  %s511_s3 = inlined_call_operand.hbm [shape: f32[32,32], index: 3, kind: input, shape index: {}]   ;;  %s512_s4 = inlined_call_operand.vmem [shape: f32[1,32], index: 4, kind: input, shape index: {}]   ;;  %s513_s5 = inlined_call_operand.hbm [shape: f32[32,32], index: 5, kind: input, shape index: {}]   ;;  %s514_s6 = inlined_call_operand.vmem [shape: f32[1,32], index: 6, kind: input, shape index: {}]   ;;  %s515_s7 = inlined_call_operand.vmem [shape: f32[1,32], index: 7, kind: input, shape index: {}]   ;;  %s516_s8 = inlined_call_operand.<no memory space> [shape: f32[1,1], index: 8, kind: input, shape index: {}]   ;;  %s517_s9 = inlined_call_operand.vmem [shape: f32[2,1], index: 9, kind: output, shape index: {}]  }
   0x1   :  { %v14_v0 = vstv %s516_s8 }
   0x2   :  { %15 = vst [vmem:[#allocation2] sm:$0x1] %v14_v0 }
   0x3   :  { %16 = vsyncpa [#allocation4], 0 }
   0x4   :  { %17 = vsyncpa [#allocation6], 0  ;;  %s414_s11 = smov [#allocation3]  }
   0x5   :  { %s29_s12 = sshll.u32 %s414_s11, 4  ;;  %s30_s12 = int_to_ptr.vmem [resolvable:$true] %s29_s12 }
   0x6   :  { %s378_s13 = scalar_lea.vmem %s30_s12, 512  ;;  %p383_p1 = scmp.lt.s32.totalorder %s30_s12, %s30_s12 }
   0x7   :  { %p379_p0 = scmp.ne.s32.totalorder %s30_s12, %s378_s13  ;;  %p384_p2 = scmp.lt.s32.totalorder %s378_s13, %s378_s13 }
   0x9   :  { %p385_p3 = por %p384_p2, %p383_p1 }
   0xb   :  { %p386_p4 = pnand %p385_p3, %p379_p0 }
   0xd   :  { %389 = shalt.err (!%p386_p4)
}
   0xe   :  { %s415_s14 = smov 128   ;;  %s416_s15 = smov 8  }
   0xf   :  { %35 = dma.hbm_to_vmem [thread:$0]  %s511_s3, 512, %s30_s12, [#allocation4], %s415_s14, %s415_s14, %s416_s15  }
  0x10   :  { %s417_s8 = smov [#allocation5]  }
  0x11   :  { %s43_s18 = sshll.u32 %s417_s8, 4  ;;  %s44_s18 = int_to_ptr.vmem [resolvable:$true] %s43_s18 }
  0x12   :  { %s398_s19 = scalar_lea.vmem %s44_s18, 512  ;;  %p403_p6 = scmp.lt.s32.totalorder %s44_s18, %s44_s18 }
  0x13   :  { %p399_p5 = scmp.ne.s32.totalorder %s44_s18, %s398_s19  ;;  %p404_p7 = scmp.lt.s32.totalorder %s398_s19, %s398_s19 }
  0x15   :  { %p405_p8 = por %p404_p7, %p403_p6 }
  0x17   :  { %p406_p9 = pnand %p405_p8, %p399_p5 }
  0x19   :  { %409 = shalt.err (!%p406_p9)
}
  0x1a   :  { %49 = dma.hbm_to_vmem [thread:$0]  %s513_s5, 512, %s44_s18, [#allocation6], %s415_s14, %s415_s14, %s416_s15  }
  0x1b   :  { %410 = dma.done.wait [#allocation4], 512  }
  0x1c   :  { %411 = vsyncadd [#allocation4], 4294966784 }
  0x1d   :  { %412 = dma.done.wait [#allocation6], 512  }
  0x1e   :  { %413 = vsyncadd [#allocation6], 4294966784  ;;  %v418_v1 = vmov 0   ;;  %v62_v2 = vld [vmem:[%s508_s0] sm:$0xff]  ;;  %v63_v3 = vld [vmem:[%s508_s0 + $0x8] sm:$0xff]  ;;  %v419_v5 = vmov 0.0  }
  0x1f   :  { %365 = vset.pattern.permute.xlu0 %v418_v1  ;;  %v114_v4 = vld [vmem:[#allocation3 + $0x18] sm:$0xff]  ;;  %336 = vmatprep.subr.mxu0 %v419_v5  ;;  %v113_v6 = vld [vmem:[#allocation3 + $0x10] sm:$0xff]  ;;  %vm420_vm0 = vmmov 0   ;;  %v112_v7 = vld [vmem:[#allocation3 + $0x8] sm:$0xff]  ;;  %vm94_vm1 = vcmask 261120   ;;  %vm124_vm2 = vcmask 1041409  }
  0x20   :  { %67 = vperm.xlu0 %365, %v62_v2   ;;  %344 = vmatprep.mubr.msk.f32.mxu0 %vm420_vm0, %v419_v5  ;;  %v111_v8 = vld [vmem:[#allocation3] sm:$0xff]  ;;  %v201_v9 = vld [vmem:[#allocation5 + $0x18] sm:$0xff]  ;;  %v200_v10 = vld [vmem:[#allocation5 + $0x10] sm:$0xff]  ;;  %vm291_vm3 = vcmask 254976   ;;  %vm309_vm4 = vcmask 1024  }
  0x21   :  { %337 = vmatpush3.msra.mxu0 %v114_v4  ;;  %347 = vmatprep.subr.mxu1 %v419_v5  ;;  %v317_v11 = vld [vmem:[%s509_s1] ss:$0 sm:$0xff]  ;;  %v199_v38 = vld [vmem:[#allocation5 + $0x8] sm:$0xff]  ;;  %v198_v39 = vld [vmem:[#allocation5] sm:$0xff] }
  0x22   :  { %338 = vmatprep.subr.mxu0 %v419_v5  ;;  %355 = vmatprep.mubr.msk.f32.mxu1 %vm420_vm0, %v419_v5  ;;  %v318_v12 = vld [vmem:[%s510_s2] ss:$0 sm:$0xff] }
  0x23   :  { %339 = vmatpush3.msra.mxu0 %v113_v6  ;;  %348 = vmatpush3.msra.mxu1 %v201_v9  ;;  %v319_v40 = vld [vmem:[%s512_s4] ss:$0 sm:$0xff] }
  0x24   :  { %72 = vperm.xlu0 %365, %v63_v3   ;;  %340 = vmatprep.subr.mxu0 %v419_v5  ;;  %v321_v44 = vld [vmem:[%s514_s6] ss:$0 sm:$0xff] }
  0x25   :  { %341 = vmatpush3.msra.mxu0 %v112_v7  ;;  %349 = vmatprep.subr.mxu1 %v419_v5  ;;  %v323_v48 = vld [vmem:[%s515_s7] ss:$0 sm:$0xff] }
  0x26   :  { %342 = vmatprep.subr.mxu0 %v419_v5  ;;  %350 = vmatpush3.msra.mxu1 %v200_v10  ;;  %v324_v52 = vld [vmem:[#allocation2] ss:$0 sm:$0xff] }
  0x27   :  { %343 = vmatpush3.msra.mxu0 %v111_v8  ;;  %351 = vmatprep.subr.mxu1 %v419_v5 }
  0x28   :  { %352 = vmatpush3.msra.mxu1 %v199_v38 }
  0x29   :  { %353 = vmatprep.subr.mxu1 %v419_v5 }
  0x2a   :  { %354 = vmatpush3.msra.mxu1 %v198_v39 }
  0x9b   :  { %v68_v13 = vpop.permute.xlu0 %67 }
  0x9c   :  { %v81_v14 = vmul.f32 %v317_v11, %v68_v13 }
  0x9e   :  { %v90_v15 = vadd.f32 %v318_v12, %v81_v14 }
  0x9f   :  { %v73_v16 = vpop.permute.xlu0 %72 }
  0xa0   :  { %v92_v17 = vmax.f32 %v90_v15, 0.0  ;;  %v82_v18 = vmul.f32 %v317_v11, %v73_v16 }
  0xa2   :  { %v91_v19 = vadd.f32 %v318_v12, %v82_v18  ;;  %v95_v20 = vsel %vm94_vm1, %v92_v17, 0.0 }
  0xa3   :  { %v96_v21 = vrot.slane %v95_v20, 4 }
  0xa4   :  { %v93_v22 = vmax.f32 %v91_v19, 0.0 }
  0xa5   :  { %v97_v23 = vadd.f32 %v96_v21, %v95_v20 }
  0xa6   :  { %v102_v24 = vsel %vm94_vm1, %v93_v22, 0.0 }
  0xa7   :  { %v98_v25 = vrot.slane %v97_v23, 2  ;;  %v103_v26 = vrot.slane %v102_v24, 4 }
  0xa9   :  { %v99_v27 = vadd.f32 %v98_v25, %v97_v23  ;;  %v104_v28 = vadd.f32 %v103_v26, %v102_v24 }
  0xab   :  { %v100_v29 = vrot.slane %v99_v27, 1  ;;  %v105_v30 = vrot.slane %v104_v28, 2 }
  0xad   :  { %v106_v31 = vadd.f32 %v105_v30, %v104_v28  ;;  %v101_v32 = vadd.f32 %v100_v29, %v99_v27 }
  0xaf   :  { %v107_v33 = vrot.slane %v106_v31, 1  ;;  %v109_v35 = vmul.f32 0.125, %v101_v32 }
  0xb1   :  { %v108_v34 = vadd.f32 %v107_v33, %v106_v31 }
  0xb3   :  { %v110_v36 = vmul.f32 0.125, %v108_v34 }
  0xb5   :  { %v125_v37 = vsel %vm124_vm2, %v110_v36, %v109_v35 }
  0xb6   :  { %345 = vmatmul.mubr.msk.f32.vlgmr.msra.gmra.mxu0 %vm94_vm1, %v125_v37 }
 0x176   :  { %v194_v41 = vpop.f32.mrf.mxu0 }
 0x177   :  { %v195_v42 = vadd.f32 %v319_v40, %v194_v41 }
 0x178   :  { %v346_v43 = vpop.f32.mrf.mxu0 }
 0x179   :  { %356 = vmatmul.mubr.msk.f32.vlgmr.msra.gmra.mxu1 %vm94_vm1, %v195_v42 }
 0x239   :  { %v278_v45 = vpop.f32.mrf.mxu1 }
 0x23a   :  { %v279_v46 = vadd.f32 %v321_v44, %v278_v45 }
 0x23b   :  { %v357_v47 = vpop.f32.mrf.mxu1 }
 0x23c   :  { %v282_v49 = vmax.f32 %v279_v46, 0.0 }
 0x23e   :  { %v290_v50 = vmul.f32 %v323_v48, %v282_v49 }
 0x240   :  { %v292_v51 = vsel %vm291_vm3, %v290_v50, 0.0 }
 0x241   :  { %293 = vadd.xlane.f32.xlu1 %v292_v51 }
 0x2ca   :  { %v294_v53 = vpop.xlane.xlu1 %293 }
 0x2cb   :  { %v302_v54 = vadd.f32 %v324_v52, %v294_v53 }
 0x2cd   :  { %v325_v55 = vmul.f32 -1.442695, %v302_v54 }
 0x2cf   :  { %366 = vpow2.f32 %v325_v55 }
 0x2dc   :  { %v367_v56 = vpop.eup %366 }
 0x2dd   :  { %v306_v57 = vadd.f32 1.0, %v367_v56 }
 0x2df   :  { %368 = vrcp.f32 %v306_v57 }
 0x2ec   :  { %v369_v58 = vpop.eup %368 }
 0x2ed   :  { %310 = vst.msk [vmem:[%s517_s9] sm:$0x3] %vm309_vm4, %v369_v58 }
 0x2ee   :  { %315 = vsyncpa [#allocation4], 1 }
 0x2ef   :  { %316 = vsyncpa [#allocation6], 1 }

</bundles_post_ra>
